<compile_context>
chip_gen: v7x
topology: tpu7x:2x2x1
jax: 0.10.0
libtpu: 0.0.40
codegen_flags: <defaults>
</compile_context>

<pallas_src>
import functools

import jax
import jax.numpy as jnp
from jax import lax
from jax.experimental import pallas as pl
from jax.experimental.pallas import tpu as pltpu


def _sepconv_kernel(x_ref, b_ref, o_ref, xp_ref, *, H, Ho, Wo, O, K, pad, Nb):
    # x_ref:  (Nb, H, W*C)          input rows, channels-innermost flattening
    # b_ref:  (K, W*C, Wo*O)        banded combined (depthwise*pointwise) weight
    # o_ref:  (Nb, Ho, Wo*O)        lane-dense output
    # xp_ref: (Nb, H+2*pad, W*C)    fp32 VMEM scratch for H-padded input
    WC = x_ref.shape[-1]

    # H-pad into VMEM (W-padding is already folded into the band matrix B).
    if pad > 0:
        zrows = jnp.zeros((Nb, pad, WC), jnp.float32)
        xp_ref[:, :pad, :] = zrows
        xp_ref[:, pad + H:pad + H + pad, :] = zrows
    xp_ref[:, pad:pad + H, :] = x_ref[...].astype(jnp.float32)

    # Banded matmul: one MXU call per row tap, accumulated in fp32 registers.
    acc = jnp.zeros((Nb * Ho, Wo * O), jnp.float32)
    for kh in range(K):                                   # static, unrolled
        lhs = xp_ref[:, kh:kh + Ho, :].reshape(Nb * Ho, WC)
        acc = acc + jnp.dot(lhs, b_ref[kh], preferred_element_type=jnp.float32)

    # Lane-dense store: last dim is Wo*O (=128 here) -> full-width vector stores.
    o_ref[...] = acc.reshape(Nb, Ho, Wo * O).astype(o_ref.dtype)


def separable_conv2d(x_nchw, w_dw, w_pw, *, padding=1, batch_block=1):
    """Forward pass of SeparableConv2d (stride=1, dilation=1, bias=False).

    x_nchw: (N, C, H, W)  w_dw: (C, 1, K, K)  w_pw: (O, C, 1, 1) -> (N, O, Ho, Wo)
    """
    N, C, H, W = x_nchw.shape
    K = w_dw.shape[-1]
    O = w_pw.shape[0]
    Ho = H + 2 * padding - K + 1
    Wo = W + 2 * padding - K + 1
    assert N % batch_block == 0

    # --- plain-JAX glue (done once, tiny tensors) -------------------------
    # NCHW -> (N, H, W*C): channels innermost so each input row is one
    # contiguous (W*C) lane vector that the banded matmul consumes directly.
    x = jnp.transpose(x_nchw, (0, 2, 3, 1)).reshape(N, H, W * C)

    # Combined weight Wc[kh, kw, c, o] = dw[c, 0, kh, kw] * pw[o, c, 0, 0].
    dw_t = jnp.transpose(w_dw[:, 0, :, :], (1, 2, 0)).astype(jnp.float32)  # (K,K,C)
    pw_t = jnp.transpose(w_pw[:, :, 0, 0], (1, 0)).astype(jnp.float32)     # (C,O)
    wc = dw_t[:, :, :, None] * pw_t[None, None, :, :]                      # (K,K,C,O)

    # Band matrix B[kh, w*C + c, wo*O + o] = Wc[kh, w - wo + pad, c, o]
    # (zero outside the band).  This encodes the kw shifts AND the W-padding.
    wo_i = jnp.arange(Wo)
    w_i = jnp.arange(W)
    kw = w_i[None, :] - wo_i[:, None] + padding                # (Wo, W)
    valid = (kw >= 0) & (kw < K)
    bg = wc[:, jnp.clip(kw, 0, K - 1)]                         # (K, Wo, W, C, O)
    bg = jnp.where(valid[None, :, :, None, None], bg, 0.0)
    b = jnp.transpose(bg, (0, 2, 3, 1, 4)).reshape(K, W * C, Wo * O)

    # --- Pallas call ------------------------------------------------------
    kernel = functools.partial(_sepconv_kernel, H=H, Ho=Ho, Wo=Wo, O=O, K=K,
                               pad=padding, Nb=batch_block)
    out = pl.pallas_call(
        kernel,
        out_shape=jax.ShapeDtypeStruct((N, Ho, Wo * O), x_nchw.dtype),
        grid=(N // batch_block,),
        in_specs=[
            pl.BlockSpec((batch_block, H, W * C), lambda n: (n, 0, 0)),
            pl.BlockSpec((K, W * C, Wo * O), lambda n: (0, 0, 0)),
        ],
        out_specs=pl.BlockSpec((batch_block, Ho, Wo * O), lambda n: (n, 0, 0)),
        scratch_shapes=[
            pltpu.VMEM((batch_block, H + 2 * padding, W * C), jnp.float32),
        ],
        compiler_params=pltpu.CompilerParams(
            dimension_semantics=("parallel",),
            vmem_limit_bytes=32 * 1024 * 1024,
        ),
    )(x, b)

    # (N, Ho, Wo*O) -> (N, O, Ho, Wo)
    return jnp.transpose(out.reshape(N, Ho, Wo, O), (0, 3, 1, 2))


if __name__ == "__main__":
    key = jax.random.PRNGKey(0)
    k1, k2, k3 = jax.random.split(key, 3)

    # Module hyperparameters for this synthetic instantiation:
    # in_channels=4, out_channels=8, kernel_size=3, stride=1, padding=1,
    # dilation=1, bias=False.
    N, C, H, W = 2, 4, 16, 16
    O, K, PAD = 8, 3, 1

    x = jax.random.normal(k1, (N, C, H, W), jnp.float32)
    w_dw = 0.1 * jax.random.normal(k2, (C, 1, K, K), jnp.float32)   # conv1.weight
    w_pw = 0.1 * jax.random.normal(k3, (O, C, 1, 1), jnp.float32)   # pointwise.weight

    out = separable_conv2d(x, w_dw, w_pw, padding=PAD)
    out = jax.block_until_ready(out)

    # Pure-JAX reference with nn.Conv2d semantics (NCHW, OIHW).
    ref = lax.conv_general_dilated(
        x, w_dw, (1, 1), ((PAD, PAD), (PAD, PAD)),
        feature_group_count=C, dimension_numbers=("NCHW", "OIHW", "NCHW"))
    ref = lax.conv_general_dilated(
        ref, w_pw, (1, 1), "VALID",
        dimension_numbers=("NCHW", "OIHW", "NCHW"))

    assert out.shape == ref.shape == (N, O, H, W)
    assert jnp.allclose(out, ref, atol=1e-4, rtol=1e-4)
    print("KERNEL_OK")
</pallas_src>

<mosaic_0001>
module attributes {stable_mosaic.version = 11 : i64} {
  func.func @_sepconv_kernel(%arg0: i32, %arg1: memref<1x16x64xf32, #tpu.memory_space<vmem>>, %arg2: memref<3x64x128xf32, #tpu.memory_space<vmem>>, %arg3: memref<1x16x128xf32, #tpu.memory_space<vmem>>, %arg4: memref<1x18x64xf32, #tpu.memory_space<vmem>>) attributes {dimension_semantics = [#tpu.dimension_semantics<parallel>], iteration_bounds = array<i64: 2>, scalar_prefetch = 0 : i64, scratch_operands = 1 : i64, tpu.core_type = #tpu.core_type<tc>, window_params = [{transform_indices = @transform_0, window_bounds = array<i64: 1, 16, 64>}, {pipeline_mode = #tpu.pipeline_mode<synchronous>, transform_indices = @transform_1, window_bounds = array<i64: 3, 64, 128>}, {transform_indices = @transform_2, window_bounds = array<i64: 1, 16, 128>}]} {
    %cst = arith.constant 0.000000e+00 : f32
    %0 = vector.broadcast %cst : f32 to vector<1x1x64xf32>
    %c0 = arith.constant 0 : index
    %c0_0 = arith.constant 0 : index
    %c0_1 = arith.constant 0 : index
    %1 = vector.load %arg4[%c0, %c0_0, %c0_1] : memref<1x18x64xf32, #tpu.memory_space<vmem>>, vector<1x1x64xf32>
    tpu.vector_store %arg4[%c0, %c0_0, %c0_1], %0 {strides = array<i32>} : memref<1x18x64xf32, #tpu.memory_space<vmem>>, vector<1x1x64xf32>,
    %c0_2 = arith.constant 0 : index
    %c17 = arith.constant 17 : index
    %c0_3 = arith.constant 0 : index
    %2 = vector.load %arg4[%c0_2, %c17, %c0_3] : memref<1x18x64xf32, #tpu.memory_space<vmem>>, vector<1x1x64xf32>
    tpu.vector_store %arg4[%c0_2, %c17, %c0_3], %0 {strides = array<i32>} : memref<1x18x64xf32, #tpu.memory_space<vmem>>, vector<1x1x64xf32>,
    %c0_4 = arith.constant 0 : index
    %c0_5 = arith.constant 0 : index
    %c0_6 = arith.constant 0 : index
    %3 = vector.load %arg1[%c0_4, %c0_5, %c0_6] : memref<1x16x64xf32, #tpu.memory_space<vmem>>, vector<1x16x64xf32>
    %c0_7 = arith.constant 0 : index
    %c1 = arith.constant 1 : index
    %c0_8 = arith.constant 0 : index
    %4 = vector.load %arg4[%c0_7, %c1, %c0_8] : memref<1x18x64xf32, #tpu.memory_space<vmem>>, vector<1x16x64xf32>
    tpu.vector_store %arg4[%c0_7, %c1, %c0_8], %3 {strides = array<i32>} : memref<1x18x64xf32, #tpu.memory_space<vmem>>, vector<1x16x64xf32>,
    %cst_9 = arith.constant 0.000000e+00 : f32
    %5 = vector.broadcast %cst_9 : f32 to vector<16x128xf32>
    %c0_10 = arith.constant 0 : index
    %c0_11 = arith.constant 0 : index
    %c0_12 = arith.constant 0 : index
    %6 = vector.load %arg4[%c0_10, %c0_11, %c0_12] : memref<1x18x64xf32, #tpu.memory_space<vmem>>, vector<1x16x64xf32>
    %7 = vector.shape_cast %6 : vector<1x16x64xf32> to vector<16x64xf32>
    %c0_13 = arith.constant 0 : index
    %c0_14 = arith.constant 0 : index
    %c0_15 = arith.constant 0 : index
    %8 = vector.load %arg2[%c0_13, %c0_14, %c0_15] : memref<3x64x128xf32, #tpu.memory_space<vmem>>, vector<1x64x128xf32>
    %9 = vector.shape_cast %8 : vector<1x64x128xf32> to vector<64x128xf32>
    %cst_16 = arith.constant dense<0.000000e+00> : vector<16x128xf32>
    %10 = tpu.matmul %7, %9, %cst_16 {dimension_numbers = #tpu.dot_dimension_numbers<[1], [0], [0], [1], [0, 0, 1, 1], [], []>} : vector<16x64xf32>, vector<64x128xf32>, vector<16x128xf32> -> vector<16x128xf32>
    %11 = arith.addf %5, %10 : vector<16x128xf32>
    %c0_17 = arith.constant 0 : index
    %c1_18 = arith.constant 1 : index
    %c0_19 = arith.constant 0 : index
    %12 = vector.load %arg4[%c0_17, %c1_18, %c0_19] : memref<1x18x64xf32, #tpu.memory_space<vmem>>, vector<1x16x64xf32>
    %13 = vector.shape_cast %12 : vector<1x16x64xf32> to vector<16x64xf32>
    %c1_20 = arith.constant 1 : index
    %c0_21 = arith.constant 0 : index
    %c0_22 = arith.constant 0 : index
    %14 = vector.load %arg2[%c1_20, %c0_21, %c0_22] : memref<3x64x128xf32, #tpu.memory_space<vmem>>, vector<1x64x128xf32>
    %15 = vector.shape_cast %14 : vector<1x64x128xf32> to vector<64x128xf32>
    %cst_23 = arith.constant dense<0.000000e+00> : vector<16x128xf32>
    %16 = tpu.matmul %13, %15, %cst_23 {dimension_numbers = #tpu.dot_dimension_numbers<[1], [0], [0], [1], [0, 0, 1, 1], [], []>} : vector<16x64xf32>, vector<64x128xf32>, vector<16x128xf32> -> vector<16x128xf32>
    %17 = arith.addf %11, %16 : vector<16x128xf32>
    %c0_24 = arith.constant 0 : index
    %c2 = arith.constant 2 : index
    %c0_25 = arith.constant 0 : index
    %18 = vector.load %arg4[%c0_24, %c2, %c0_25] : memref<1x18x64xf32, #tpu.memory_space<vmem>>, vector<1x16x64xf32>
    %19 = vector.shape_cast %18 : vector<1x16x64xf32> to vector<16x64xf32>
    %c2_26 = arith.constant 2 : index
    %c0_27 = arith.constant 0 : index
    %c0_28 = arith.constant 0 : index
    %20 = vector.load %arg2[%c2_26, %c0_27, %c0_28] : memref<3x64x128xf32, #tpu.memory_space<vmem>>, vector<1x64x128xf32>
    %21 = vector.shape_cast %20 : vector<1x64x128xf32> to vector<64x128xf32>
    %cst_29 = arith.constant dense<0.000000e+00> : vector<16x128xf32>
    %22 = tpu.matmul %19, %21, %cst_29 {dimension_numbers = #tpu.dot_dimension_numbers<[1], [0], [0], [1], [0, 0, 1, 1], [], []>} : vector<16x64xf32>, vector<64x128xf32>, vector<16x128xf32> -> vector<16x128xf32>
    %23 = arith.addf %17, %22 : vector<16x128xf32>
    %24 = vector.shape_cast %23 : vector<16x128xf32> to vector<1x16x128xf32>
    %c0_30 = arith.constant 0 : index
    %c0_31 = arith.constant 0 : index
    %c0_32 = arith.constant 0 : index
    %25 = vector.load %arg3[%c0_30, %c0_31, %c0_32] : memref<1x16x128xf32, #tpu.memory_space<vmem>>, vector<1x16x128xf32>
    tpu.vector_store %arg3[%c0_30, %c0_31, %c0_32], %24 {strides = array<i32>} : memref<1x16x128xf32, #tpu.memory_space<vmem>>, vector<1x16x128xf32>,
    return
  }
  func.func @transform_0(%arg0: i32) -> (i32, i32, i32) {
    %c0_i32 = arith.constant 0 : i32
    %c0_i32_0 = arith.constant 0 : i32
    %c0_i32_1 = arith.constant 0 : i32
    return %arg0, %c0_i32, %c0_i32_0 : i32, i32, i32
  }
  func.func @transform_1(%arg0: i32) -> (i32, i32, i32) {
    %c0_i32 = arith.constant 0 : i32
    %c0_i32_0 = arith.constant 0 : i32
    %c0_i32_1 = arith.constant 0 : i32
    %c0_i32_2 = arith.constant 0 : i32
    return %c0_i32, %c0_i32_0, %c0_i32_1 : i32, i32, i32
  }
  func.func @transform_2(%arg0: i32) -> (i32, i32, i32) {
    %c0_i32 = arith.constant 0 : i32
    %c0_i32_0 = arith.constant 0 : i32
    %c0_i32_1 = arith.constant 0 : i32
    return %arg0, %c0_i32, %c0_i32_0 : i32, i32, i32
  }
}

</mosaic_0001>

<bundles_post_ra>
// kernel: tpu_custom_call.1
= control target key start
LH: loop header
LB: loop body
LE: loop exit
PB: predicated region body
PF: predicated region fallthrough
CT: control target
= control target key end

     0   :  { %7 = vsyncpa [#allocation4], 0  ;;  %s1158_s0 = inlined_call_operand.hbm [shape: f32[2,16,64], index: 0, kind: input, shape index: {}]   ;;  %s1159_s1 = inlined_call_operand.hbm [shape: f32[3,64,128], index: 1, kind: input, shape index: {}]   ;;  %s1160_s2 = inlined_call_operand.hbm [shape: f32[2,16,128], index: 2, kind: output, shape index: {}]  }
   0x1   :  { %9 = vsyncpa [#allocation4 + $0x1], 0 }
   0x2   :  { %10 = vsyncpa [#allocation7], 0 }
   0x3   :  { %11 = vsyncpa [#allocation5], 0 }
   0x4   :  { %13 = vsyncpa [#allocation5 + $0x1], 0  ;;  %s939_s9 = smov 0   ;;  %s941_s10 = smov 0  }
   0x5   :  { %s943_s11 = smov 0   ;;  %s945_s12 = smov 0  }
   0x6 LB: > { %s960_s13 = sadd.s32 4294967295, %s914_s12   ;;  %s561_s14 = sadd.s32 4294967294, %s914_s12   ;;  %s914_s12 = sphi %s945_s12, %s1180_s12   ;;  %s910_s11 = sphi %s943_s11, %s1179_s11   ;;  %s906_s10 = sphi %s941_s10, %s1178_s10   ;;  %s902_s9 = sphi %s939_s9, %s1177_s9  }
   0x7   : > { %p39_p0 = scmp.ne.s32.totalorder %s906_s10, %s902_s9  ;;  %p1161_p1 = scmp.eq.s32.totalorder %s960_s13, 0 }
   0x8   : > { %p90_p3 = scmp.eq.s32.totalorder %s561_s14, 1  ;;  %p562_p5 = scmp.ge.s32.totalorder %s914_s12, 1 }
   0x9   : > { %p969_p4 = por %p1161_p1, %p39_p0  ;;  %p97_p7 = scmp.lt.s32.totalorder %s914_s12, 3 }
   0xa   : > { %p974_p6 = por %p90_p3, %p39_p0  ;;  %s916_s18 = smov [#allocation6]  }
   0xb   : > { %s1164_s15 = scalar_select %p969_p4, 1, 0 }
   0xc   : > { %s1165_s16 = scalar_select %p974_p6, 1, 0 }
   0xd   : > { %p979_p8 = pnand %p562_p5, %p97_p7  ;;  %s109_s19 = sshll.u32 %s916_s18, 4  ;;  %s983_s19 = int_to_ptr.vmem [resolvable:$true] %s109_s19 }
   0xe   : > { %s995_s21 = sadd.s32 1, %s914_s12   ;;  %s26_s22 = sadd.s32 1, %s910_s11 }
   0xf   : > { %s1166_s17 = scalar_select %p979_p8, 1, 0 }
  0x10   : > { %p732_p9 = pneg %p979_p8  ;;  %s23_s23 = ssub.s32 %s914_s12, %s995_s21 }
  0x11   : > { %s786_s26 = scalar_lea.hbm %s1159_s1, 3072 }
  0x12   : > { %p990_p11 = pnand %p732_p9, %p1161_p1  ;;  %p787_p12 = scmp.ne.s32.totalorder %s1159_s1, %s786_s26 }
  0x13   : > { %p793_p5 = scmp.lt.u32.totalorder %s786_s26, %s1159_s1 }
  0x14   : > { %p788_p13 = pneg %p990_p11 }
  0x16   : > { %p789_p0 = pnand %p788_p13, %p787_p12 }
  0x18   : > { %p790_p3 = pneg %p789_p0 }
  0x1a   : > { %p795_p7 = pnand %p793_p5, %p790_p3 }
  0x1c   : > { %798 = shalt.err (!%p795_p7)
}
  0x1d   : > { %s799_s3 = scalar_lea.vmem %s983_s19, 3072  ;;  %p807_p2 = scmp.lt.s32.totalorder %s983_s19, %s983_s19 }
  0x1e   : > { %p800_p9 = scmp.ne.s32.totalorder %s983_s19, %s799_s3  ;;  %p808_p6 = scmp.lt.s32.totalorder %s799_s3, %s799_s3 }
  0x20   : > { %p802_p10 = pnand %p800_p9, %p788_p13  ;;  %p809_p4 = por %p808_p6, %p807_p2 }
  0x22   : > { %p803_p1 = pneg %p802_p10 }
  0x24   : > { %p810_p8 = pnand %p809_p4, %p803_p1 }
  0x26   : > { %813 = shalt.err (!%p810_p8)
}
  0x27   : > { %s917_s4 = smov 128   ;;  %s918_s5 = smov 8  }
  0x28   : > { %735 = dma.hbm_to_vmem [thread:$0]  (!%p990_p11), %s1159_s1, 3072, %s983_s19, [#allocation7], %s917_s4, %s917_s4, %s918_s5  }
  0x29   : > { %p24_p1 = scmp.eq.s32.totalorder %s23_s23, 0  ;;  %p33_p2 = scmp.ne.s32.totalorder %s910_s11, %s906_s10 }
  0x2a   : > { %p34_p4 = scmp.eq.s32.totalorder %s914_s12, 0  ;;  %p745_p6 = scmp.lt.s32.totalorder %s914_s12, 2 }
  0x2b   : > { %s1029_s8 = scalar_select %p24_p1, %s910_s11, %s26_s22  }
  0x2c   : > { %p35_p8 = por %p34_p4, %p33_p2  ;;  %p1168_p10 = scmp.eq.s32.totalorder %s960_s13, 1 }
  0x2d   : > { %s123_s18 = sand.u32 1, %s910_s11   ;;  %s583_s20 = sshll.u32 %s914_s12, 8 }
  0x2e   : > { %p1033_p12 = por %p1168_p10, %p33_p2  ;;  %s565_s24 = sshll.u32 %s123_s18, 4 }
  0x2f   : > { %s1042_s27 = scalar_lea.hbm %s1158_s0, %s583_s20  ;;  %s127_s19 = scalar_lea.vmem [#allocation3], %s565_s24 }
  0x30   : > { %s134_s22 = sshll.u32 %s127_s19, 4  ;;  %p1044_p11 = pnand %p745_p6, %p35_p8  ;;  %s1048_s22 = int_to_ptr.vmem [resolvable:$true] %s134_s22 }
  0x31   : > { %s1050_s28 = scalar_lea.sflag [#allocation4], %s123_s18  ;;  %s814_s29 = scalar_lea.hbm %s1042_s27, 256 }
  0x32   : > { %p815_p13 = scmp.ne.s32.totalorder %s1042_s27, %s814_s29  ;;  %p816_p0 = pneg %p1044_p11 }
  0x33   : > { %s819_s6 = scalar_lea.hbm %s1158_s0, 512  ;;  %p820_p7 = scmp.lt.u32.totalorder %s1042_s27, %s1158_s0 }
  0x34   : > { %p817_p3 = pnand %p816_p0, %p815_p13  ;;  %p821_p9 = scmp.lt.u32.totalorder %s819_s6, %s814_s29 }
  0x35   : > { %p823_p2 = scmp.lt.u32.totalorder %s814_s29, %s1042_s27 }
  0x36   : > { %p818_p5 = pneg %p817_p3  ;;  %p822_p1 = por %p821_p9, %p820_p7 }
  0x38   : > { %p824_p4 = por %p823_p2, %p822_p1 }
  0x3a   : > { %p825_p6 = pnand %p824_p4, %p818_p5 }
  0x3c   : > { %828 = shalt.err (!%p825_p6)
}
  0x3d   : > { %s829_s18 = scalar_lea.vmem %s1048_s22, 256  ;;  %s919_s24 = smov [#allocation3]  }
  0x3e   : > { %p830_p8 = scmp.ne.s32.totalorder %s1048_s22, %s829_s18  ;;  %s834_s25 = sshll.u32 %s919_s24, 4  ;;  %s835_s25 = int_to_ptr.vmem [resolvable:$false] %s834_s25 }
  0x3f   : > { %s836_s26 = scalar_lea.vmem %s835_s25, 512  ;;  %p837_p3 = scmp.lt.s32.totalorder %s1048_s22, %s835_s25 }
  0x40   : > { %p832_p10 = pnand %p830_p8, %p816_p0  ;;  %p838_p7 = scmp.lt.s32.totalorder %s836_s26, %s829_s18 }
  0x42   : > { %p833_p13 = pneg %p832_p10  ;;  %p839_p9 = por %p838_p7, %p837_p3 }
  0x44   : > { %p840_p1 = pnand %p839_p9, %p833_p13 }
  0x46   : > { %843 = shalt.err (!%p840_p1)
}
  0x47   : > { %739 = dma.hbm_to_vmem [thread:$0]  (!%p1044_p11), %s1042_s27, 256, %s1048_s22, %s1050_s28, %s917_s4, %s917_s4, %s918_s5  }
  0x48   : > { %p1171_p0 = scmp.ne.s32.totalorder %s1166_s17, 0 }
  0x49   : > { %s1084_s19 = sand.u32 (!%p1171_p0), 1, %s906_s10   ;;  %p1172_p5 = scmp.ne.s32.totalorder (!%p1171_p0), %s1164_s15, 0 }
  0x4a   : > { %146 = sbr.rel (%p1171_p0) target bundleno = 350 (0x15e), region = 28  ;;  %s569_s29 = sshll.u32 (!%p1171_p0), %s1084_s19, 4 }
  0x4b   : > { %s149_s30 = scalar_lea.sflag (!%p1171_p0), [#allocation4], %s1084_s19  ;;  %s152_s23 = scalar_lea.vmem (!%p1171_p0), [#allocation3], %s569_s29 }
  0x51   : > { %889 = dma.done.wait (%p1172_p5), %s149_s30, 256  }
  0x52   : > { %891 = vsyncadd (%p1172_p5), %s149_s30, 4294967040  ;;  %p1173_p11 = scmp.eq.s32.totalorder %s960_s13, 0 }
  0x54   : > { %893 = dma.done.wait (%p1173_p11), [#allocation7], 3072   ;;  %p1174_p2 = pmov %p1173_p11 }
  0x55   : > { %vm177_vm0 = vcmask 516096   ;;  %v920_v0 = vmov 0.0   ;;  %v187_v1 = vld [vmem:[#allocation6] sm:$0xff]  ;;  %v188_v2 = vld [vmem:[#allocation6 + $0x8] sm:$0xff]  ;;  %v189_v3 = vld [vmem:[#allocation6 + $0x10] sm:$0xff]  ;;  %vm182_vm1 = vcmask 523264  }
  0x56   : > { %895 = vsyncadd (%p1174_p2), [#allocation7], 4294964224  ;;  %178 = vst.msk [vmem:[#allocation2] sm:$0x1] %vm177_vm0, %v920_v0  ;;  %v688_v4 = vpack.c.bf16 %v188_v2, %v187_v1  ;;  %v190_v5 = vld [vmem:[#allocation6 + $0x18] sm:$0xff]  ;;  %v191_v7 = vld [vmem:[#allocation6 + $0x20] sm:$0xff] }
  0x57   : > { %179 = vst.msk [vmem:[#allocation2 + $0x11] sm:$0x1] %vm177_vm0, %v920_v0  ;;  %v692_v6 = vpack.c.bf16 %v190_v5, %v189_v3  ;;  %v192_v8 = vld [vmem:[#allocation6 + $0x28] sm:$0xff]  ;;  %v198_v9 = vld [vmem:[#allocation6 + $0x40] sm:$0xff]  ;;  %v200_v14 = vld [vmem:[#allocation6 + $0x50] sm:$0xff]  ;;  %s176_s15 = scalar_lea.vmem [#allocation8], %s569_s29 }
  0x58   : > { %689 = vmatprep.subr.bf16.mxu0 %v688_v4  ;;  %v199_v10 = vld [vmem:[#allocation6 + $0x48] sm:$0xff]  ;;  %v180_v11 = vld [vmem:[%s152_s23] sm:$0xff]  ;;  %v696_v15 = vpack.c.bf16 %v192_v8, %v191_v7  ;;  %v201_v17 = vld [vmem:[#allocation6 + $0x58] sm:$0xff]  ;;  %s478_s17 = sshll.u32 %s176_s15, 4  ;;  %s584_s4 = sshll.u32 %s960_s13, 8  ;;  %s1109_s17 = int_to_ptr.vmem [resolvable:$true] %s478_s17 }
  0x59   : > { %v181_v12 = vld [vmem:[%s152_s23 + $0x8] sm:$0xff]  ;;  %691 = vmatpush3.bf16.msra.mxu0 %v688_v4  ;;  %v672_v13 = vpack.c.bf16 %v199_v10, %v198_v9  ;;  %183 = vst.msk [vmem:[#allocation2 + $0x1] sm:$0xff] %vm182_vm1, %v180_v11  ;;  %v193_v16 = vld [vmem:[#allocation6 + $0x30] sm:$0xff]  ;;  %v676_v19 = vpack.c.bf16 %v201_v17, %v200_v14  ;;  %v202_v20 = vld [vmem:[#allocation6 + $0x60] sm:$0xff]  ;;  %s1114_s22 = scalar_lea.hbm %s1160_s2, %s584_s4  ;;  %s465_s28 = scalar_lea.sflag [#allocation5], %s1084_s19 }
  0x5a   : > { %184 = vst.msk [vmem:[#allocation2 + $0x9] sm:$0xff] %vm182_vm1, %v181_v12  ;;  %693 = vmatprep.subr.bf16.mxu0 %v692_v6  ;;  %v194_v18 = vld [vmem:[#allocation6 + $0x38] sm:$0xff]  ;;  %v203_v21 = vld [vmem:[#allocation6 + $0x68] sm:$0xff]  ;;  %v204_v24 = vld [vmem:[#allocation6 + $0x70] sm:$0xff]  ;;  %s844_s3 = scalar_lea.vmem %s1109_s17, 256  ;;  %s921_s13 = smov [#allocation8]  }
  0x5b   : > { %673 = vmatprep.subr.bf16.mxu1 %v672_v13  ;;  %v700_v22 = vpack.c.bf16 %v194_v18, %v193_v16  ;;  %v680_v23 = vpack.c.bf16 %v203_v21, %v202_v20  ;;  %v205_v25 = vld [vmem:[#allocation6 + $0x78] sm:$0xff]  ;;  %v371_v26 = vld [vmem:[#allocation6 + $0x80] sm:$0xff]  ;;  %v372_v27 = vld [vmem:[#allocation6 + $0x88] sm:$0xff]  ;;  %p845_p4 = scmp.ne.s32.totalorder %s1109_s17, %s844_s3  ;;  %s848_s6 = sshll.u32 %s921_s13, 4  ;;  %s849_s6 = int_to_ptr.vmem [resolvable:$false] %s848_s6 }
  0x5c   : > { %675 = vmatpush3.bf16.msra.mxu1 %v672_v13  ;;  %v684_v30 = vpack.c.bf16 %v205_v25, %v204_v24  ;;  %v704_v31 = vpack.c.bf16 %v372_v27, %v371_v26  ;;  %v373_v32 = vld [vmem:[#allocation6 + $0x90] sm:$0xff]  ;;  %v374_v33 = vld [vmem:[#allocation6 + $0x98] sm:$0xff]  ;;  %v375_v37 = vld [vmem:[#allocation6 + $0xa0] sm:$0xff]  ;;  %s850_s7 = scalar_lea.vmem %s849_s6, 512  ;;  %p851_p10 = scmp.lt.s32.totalorder %s1109_s17, %s849_s6 }
  0x5d   : > { %695 = vmatpush3.bf16.msra.mxu0 %v692_v6  ;;  %677 = vmatprep.subr.bf16.mxu1 %v676_v19  ;;  %v708_v35 = vpack.c.bf16 %v374_v33, %v373_v32  ;;  %v376_v38 = vld [vmem:[#allocation6 + $0xa8] sm:$0xff]  ;;  %v377_v41 = vld [vmem:[#allocation6 + $0xb0] sm:$0xff]  ;;  %v378_v42 = vld [vmem:[#allocation6 + $0xb8] sm:$0xff]  ;;  %p846_p6 = pnand %p845_p4, %p1033_p12  ;;  %p852_p13 = scmp.lt.s32.totalorder %s850_s7, %s844_s3 }
  0x5e   : > { %697 = vmatprep.subr.bf16.mxu0 %v696_v15  ;;  %v712_v40 = vpack.c.bf16 %v376_v38, %v375_v37  ;;  %v716_v43 = vpack.c.bf16 %v378_v42, %v377_v41 }
  0x5f   : > { %p847_p8 = pneg %p846_p6  ;;  %p853_p3 = por %p852_p13, %p851_p10 }
  0x60   : > { %v185_v28 = vld [vmem:[#allocation2] sm:$0xff]  ;;  %679 = vmatpush3.bf16.msra.mxu1 %v676_v19 }
  0x61   : > { %v195_v29 = vld [vmem:[#allocation2 + $0x1] sm:$0xff]  ;;  %699 = vmatpush3.bf16.msra.mxu0 %v696_v15  ;;  %650 = vmatprep.mubr.msk.f32.mxu0 %vm182_vm1, %v185_v28  ;;  %v196_v39 = vld [vmem:[#allocation2 + $0x9] sm:$0xff]  ;;  %p854_p7 = pnand %p853_p3, %p847_p8 }
  0x62   : > { %701 = vmatprep.subr.bf16.mxu0 %v700_v22  ;;  %681 = vmatprep.subr.bf16.mxu1 %v680_v23  ;;  %v186_v34 = vld [vmem:[#allocation2 + $0x8] sm:$0xff] }
  0x63   : > { %631 = vmatprep.mubr.msk.f32.mxu1 %vm182_vm1, %v195_v29  ;;  %v368_v36 = vld [vmem:[#allocation2 + $0x2] sm:$0xff]  ;;  %v369_v44 = vld [vmem:[#allocation2 + $0xa] sm:$0xff] }
  0x64   : > { %683 = vmatpush3.bf16.msra.mxu1 %v680_v23 }
  0x65   : > { %703 = vmatpush3.bf16.msra.mxu0 %v700_v22  ;;  %685 = vmatprep.subr.bf16.mxu1 %v684_v30 }
  0x66   : > { %705 = vmatprep.subr.bf16.mxu0 %v704_v31 }
  0x68   : > { %651 = vmatmul.mubr.msk.f32.vlgmr.msra.gmra.mrb[0].mxu0 %vm182_vm1, %v186_v34  ;;  %687 = vmatpush3.bf16.msra.mxu1 %v684_v30 }
  0x69   : > { %707 = vmatpush3.bf16.msra.mxu0 %v704_v31  ;;  %669 = vmatprep.mubr.msk.f32.mxu0 %vm182_vm1, %v368_v36 }
  0x6a   : > { %709 = vmatprep.subr.bf16.mxu0 %v708_v35 }
  0x6b   : > { %632 = vmatmul.mubr.msk.f32.vlgmr.msra.gmra.mrb[0].mxu1 %vm182_vm1, %v196_v39 }
  0x6d   : > { %711 = vmatpush3.bf16.msra.mxu0 %v708_v35 }
  0x6e   : > { %713 = vmatprep.subr.bf16.mxu0 %v712_v40 }
  0x71   : > { %715 = vmatpush3.bf16.msra.mxu0 %v712_v40 }
  0x72   : > { %717 = vmatprep.subr.bf16.mxu0 %v716_v43 }
  0x75   : > { %719 = vmatpush3.bf16.msra.mxu0 %v716_v43 }
  0x78   : > { %670 = vmatmul.mubr.msk.f32.vlgmr.msra.gmra.mrb[0].mxu0 %vm182_vm1, %v369_v44 }
 0x13e   : > { %v633_v45 = vpop.f32.mrb[0].mxu1 }
 0x13f   : > { %v278_v46 = vpop.f32.mrb[1].mxu1 }
 0x14b   : > { %v671_v47 = vpop.f32.mrb[0].mxu0 }
 0x14c   : > { %v720_v48 = vadd.f32 %v671_v47, %v633_v45  ;;  %v451_v49 = vpop.f32.mrb[1].mxu0 }
 0x14d   : > { %v721_v50 = vadd.f32 %v451_v49, %v278_v46 }
 0x14e   : > { %463 = vst [vmem:[%s176_s15 + $0x8] sm:$0xff] %v720_v48 }
 0x14f   : > { %462 = vst [vmem:[%s176_s15] sm:$0xff] %v721_v50 }
 0x150   : > { %857 = shalt.err (!%p854_p7)
}
 0x151   : > { %s858_s20 = scalar_lea.hbm %s1114_s22, 256  ;;  %s862_s25 = scalar_lea.hbm %s1160_s2, 512 }
 0x152   : > { %p859_p9 = scmp.ne.s32.totalorder %s1114_s22, %s858_s20  ;;  %p863_p5 = scmp.lt.u32.totalorder %s1114_s22, %s1160_s2 }
 0x153   : > { %p864_p11 = scmp.lt.u32.totalorder %s862_s25, %s858_s20  ;;  %p866_p4 = scmp.lt.u32.totalorder %s858_s20, %s1114_s22 }
 0x154   : > { %p860_p1 = pnand %p859_p9, %p1033_p12 }
 0x155   : > { %p865_p2 = por %p864_p11, %p863_p5 }
 0x156   : > { %p861_p0 = pneg %p860_p1 }
 0x157   : > { %p867_p6 = por %p866_p4, %p865_p2 }
 0x159   : > { %p868_p8 = pnand %p867_p6, %p861_p0 }
 0x15b   : > { %871 = shalt.err (!%p868_p8)
}
 0x15c   : > { %s922_s30 = smov 128   ;;  %s923_s23 = smov 8  }
 0x15d   : > { %730 = dma.vmem_to_hbm [thread:$0]  (%p1033_p12), %s1109_s17, 256, %s1114_s22, %s465_s28, %s922_s30, %s922_s30, %s923_s23  }
 0x15e PF: > { %s493_s15 = sand.u32 1, %s902_s9   ;;  %p1175_p10 = scmp.ne.s32.totalorder %s1165_s16, 0 }
 0x15f   : > { %p1176_p13 = scmp.ge.s32.totalorder %s914_s12, 2  ;;  %s494_s4 = scalar_lea.sflag [#allocation5], %s493_s15 }
 0x161   : > { %p741_p3 = pnand %p1176_p13, %p1175_p10 }
 0x163   : > { %897 = dma.done.wait (!%p741_p3), %s494_s4, 256  }
 0x164   : > { %899 = vsyncadd (!%p741_p3), %s494_s4, 4294967040  ;;  %p16_p7 = scmp.ge.s32.totalorder %s995_s21, 4   ;;  %s1177_s9 = smov %s906_s10 }
 0x165   : > { %s1178_s10 = smov %s910_s11  ;;  %s1179_s11 = smov %s1029_s8 }
 0x166   : > { %s1180_s12 = smov %s995_s21  ;;  %18 = sbr.rel (!%p16_p7) target bundleno = 6 (0x6), region = 79 }
 0x16d   :  { %499 = vsyncpa [#allocation4], 1 }
 0x16e   :  { %501 = vsyncpa [#allocation4 + $0x1], 1 }
 0x16f   :  { %502 = vsyncpa [#allocation7], 1 }
 0x170   :  { %503 = vsyncpa [#allocation5], 1 }
 0x171   :  { %505 = vsyncpa [#allocation5 + $0x1], 1 }

</bundles_post_ra>
